<compile_context>
chip_gen: v7x
topology: tpu7x:2x2x1
jax: 0.10.0
libtpu: 0.0.40
codegen_flags: <defaults>
</compile_context>

<pallas_src>
import math
from typing import NamedTuple

import jax
import jax.numpy as jnp
from jax.experimental import pallas as pl
from jax.experimental.pallas import tpu as pltpu


_SQRT_2_OVER_PI = 0.7978845608028654
_VMEM_TILE_BUDGET = 36 * 1024 * 1024   # bytes for double-buffered tiles + f32 intermediates
_VMEM_LIMIT_BYTES = 48 * 1024 * 1024   # explicit scoped-VMEM limit (safe on v5e/v6e/v7x)
_MIN_GRID_STEPS = 4                     # keep both v7x TCs busy + allow pipelining


def _round_up(x, n):
    return -(-x // n) * n


def _gelu_tanh(x):
    # tanh-approx GELU: 0.5*x*(1 + tanh(sqrt(2/pi)*(x + 0.044715*x^3)))  -- tanh lowers to EUP.
    c = jnp.asarray(_SQRT_2_OVER_PI, x.dtype)
    return 0.5 * x * (1.0 + jnp.tanh(c * (x + 0.044715 * (x * x * x))))


def predictor_ss_kernel(x_ref, w1_ref, b1_ref, w2_ref, b2_ref, o_ref):
    # x_ref: (tm, kin) f32     w1_ref: (kin, kout) bf16   b1_ref: (1, kout) f32
    # w2_ref: (kout, kout) bf16   b2_ref: (1, kout) f32   o_ref: (tm, kout) f32
    x = x_ref[...].astype(jnp.bfloat16)                       # bf16 MXU operand
    h = jnp.dot(x, w1_ref[...], preferred_element_type=jnp.float32) + b1_ref[...]
    h = _gelu_tanh(h)                                         # f32 on VPU/EUP
    y = jnp.dot(h.astype(jnp.bfloat16), w2_ref[...],
                preferred_element_type=jnp.float32) + b2_ref[...]
    y = _gelu_tanh(y)
    o_ref[...] = y.astype(o_ref.dtype)


class PreparedParams(NamedTuple):
    w1: jax.Array   # (kin, kout) bf16
    b1: jax.Array   # (1, kout)   f32
    w2: jax.Array   # (kout, kout) bf16
    b2: jax.Array   # (1, kout)   f32
    pack: int
    e: int
    kin: int
    kh: int
    kout: int


def prepare_params(w1, b1, w2, b2):
    """One-time weight prep (kron replication / lane padding / bf16 cast).

    w1: (2E, E), b1: (1, E), w2: (E, E), b2: (1, E)  (x @ W + b convention).
    """
    two_e, e = w1.shape
    assert two_e == 2 * e and w2.shape == (e, e)

    if e < 128 and 128 % e == 0:
        pack = 128 // e
    else:
        pack = 1
    kin = pack * two_e
    kh = pack * e
    kout = _round_up(kh, 128)

    w1_k, b1_k, w2_k, b2_k = w1, b1, w2, b2
    if pack > 1:
        eye = jnp.eye(pack, dtype=jnp.float32)
        w1_k = jnp.kron(eye, w1.astype(jnp.float32))   # (kin, kh), block-diagonal
        w2_k = jnp.kron(eye, w2.astype(jnp.float32))   # (kh, kh),  block-diagonal
        b1_k = jnp.tile(b1, (1, pack))
        b2_k = jnp.tile(b2, (1, pack))
    if kout != kh:  # lane-density padding for E with 128 % E != 0
        w1_k = jnp.pad(w1_k, ((0, 0), (0, kout - kh)))
        w2_k = jnp.pad(w2_k, ((0, kout - kh), (0, kout - kh)))
        b1_k = jnp.pad(b1_k, ((0, 0), (0, kout - kh)))
        b2_k = jnp.pad(b2_k, ((0, 0), (0, kout - kh)))

    return PreparedParams(
        w1=w1_k.astype(jnp.bfloat16),
        b1=b1_k.astype(jnp.float32),
        w2=w2_k.astype(jnp.bfloat16),
        b2=b2_k.astype(jnp.float32),
        pack=pack, e=e, kin=kin, kh=kh, kout=kout,
    )


def predictor_ss_forward(pair_embedding, params: PreparedParams, *, tm=4096):
    """pair_embedding: (..., 2E) float32.  Returns (..., E) float32."""
    e, pack, kin, kh, kout = params.e, params.pack, params.kin, params.kh, params.kout
    assert pair_embedding.shape[-1] == 2 * e
    lead = pair_embedding.shape[:-1]
    x = pair_embedding.reshape(-1, 2 * e)
    m = x.shape[0]

    # Minimal padding: only enough rows so the lane-packing reshape is legal (< pack rows).
    m_pad = _round_up(max(m, 1), pack)
    if m_pad != m:
        x = jnp.pad(x, ((0, m_pad - m), (0, 0)))
    m_packed = m_pad // pack
    xp = x.reshape(m_packed, kin)              # pure row-major reshape (free)

    # ---- row-tile selection ----
    tm = max(8, (tm // 8) * 8)
    bytes_per_row = 2 * kin * 4 + 2 * kout * 4 + 2 * kout * 4   # x dbl-buf + out dbl-buf + h/y f32
    tm_budget = max(8, (_VMEM_TILE_BUDGET // bytes_per_row) // 8 * 8)
    tm_split = max(8, _round_up(pl.cdiv(m_packed, _MIN_GRID_STEPS), 8))
    if m_packed <= 8:
        tm_eff = m_packed                       # block == full array dim (always legal)
    else:
        tm_eff = min(tm, tm_budget, tm_split)   # multiple of 8
    grid = (pl.cdiv(m_packed, tm_eff),)         # Pallas handles the partial last block

    out = pl.pallas_call(
        predictor_ss_kernel,
        out_shape=jax.ShapeDtypeStruct((m_packed, kout), pair_embedding.dtype),
        grid_spec=pl.GridSpec(
            grid=grid,
            in_specs=[
                pl.BlockSpec((tm_eff, kin), lambda i: (i, 0)),   # x tile
                pl.BlockSpec((kin, kout), lambda i: (0, 0)),     # W1 (bf16, VMEM-resident)
                pl.BlockSpec((1, kout), lambda i: (0, 0)),       # b1
                pl.BlockSpec((kout, kout), lambda i: (0, 0)),    # W2 (bf16, VMEM-resident)
                pl.BlockSpec((1, kout), lambda i: (0, 0)),       # b2
            ],
            out_specs=pl.BlockSpec((tm_eff, kout), lambda i: (i, 0)),
        ),
        compiler_params=pltpu.CompilerParams(
            dimension_semantics=("parallel",),
            vmem_limit_bytes=_VMEM_LIMIT_BYTES,
        ),
    )(xp, params.w1, params.b1, params.w2, params.b2)

    if kout != kh:
        out = out[:, :kh]                       # drop lane-padding columns
    out = out.reshape(m_pad, e)                 # undo lane packing (row-major, free)
    if m_pad != m:
        out = out[:m]                           # drop padded rows
    return out.reshape(*lead, e)


def init_params(key, embedding_dim):
    """Deterministic init mimicking nn.Linear's uniform(-1/sqrt(in), 1/sqrt(in)).
    Weights stored as (in_features, out_features)."""
    e = embedding_dim
    k1, k2, k3, k4 = jax.random.split(key, 4)
    lim1 = 1.0 / math.sqrt(2 * e)
    lim2 = 1.0 / math.sqrt(e)
    w1 = jax.random.uniform(k1, (2 * e, e), jnp.float32, -lim1, lim1)
    b1 = jax.random.uniform(k2, (1, e), jnp.float32, -lim1, lim1)
    w2 = jax.random.uniform(k3, (e, e), jnp.float32, -lim2, lim2)
    b2 = jax.random.uniform(k4, (1, e), jnp.float32, -lim2, lim2)
    return w1, b1, w2, b2


def reference_forward(pair_embedding, w1, b1, w2, b2):
    # Exact f32 / erf reference (PyTorch nn.GELU() default).
    h = jnp.einsum("...i,io->...o", pair_embedding, w1) + b1[0]
    h = jax.nn.gelu(h, approximate=False)
    y = jnp.einsum("...i,io->...o", h, w2) + b2[0]
    return jax.nn.gelu(y, approximate=False)


if __name__ == "__main__":
    # Tolerance vs the exact-erf f32 reference is relaxed because the kernel uses bf16 MXU
    # operands and tanh-approx GELU (per performance review).
    ATOL = 3e-2
    RTOL = 3e-2

    embedding_dim = 32
    B, L = 2, 8                      # pair embedding: (B, L, L, 2*E)
    key = jax.random.PRNGKey(0)
    kx, kp, kx2 = jax.random.split(key, 3)

    pair_embedding = jax.random.normal(kx, (B, L, L, 2 * embedding_dim), jnp.float32)
    w1, b1, w2, b2 = init_params(kp, embedding_dim)
    params = prepare_params(w1, b1, w2, b2)      # one-time weight prep (hoisted)

    out = jax.block_until_ready(predictor_ss_forward(pair_embedding, params))
    ref = reference_forward(pair_embedding, w1, b1, w2, b2)
    assert out.shape == (B, L, L, embedding_dim)
    assert jnp.allclose(out, ref, atol=ATOL, rtol=RTOL), "mismatch vs JAX reference"

    # Ragged M (forces the minimal-pad + partial-last-block path).
    pe_odd = pair_embedding[:, :5, :7, :]
    out_odd = jax.block_until_ready(predictor_ss_forward(pe_odd, params))
    ref_odd = reference_forward(pe_odd, w1, b1, w2, b2)
    assert jnp.allclose(out_odd, ref_odd, atol=ATOL, rtol=RTOL), "mismatch (ragged M)"

    # E with 128 % E != 0 (pack=1, lane-padded output columns).
    e48 = 48
    w1b, b1b, w2b, b2b = init_params(jax.random.PRNGKey(1), e48)
    params48 = prepare_params(w1b, b1b, w2b, b2b)
    pe48 = jax.random.normal(kx2, (B, L, L, 2 * e48), jnp.float32)
    out48 = jax.block_until_ready(predictor_ss_forward(pe48, params48))
    ref48 = reference_forward(pe48, w1b, b1b, w2b, b2b)
    assert out48.shape == (B, L, L, e48)
    assert jnp.allclose(out48, ref48, atol=ATOL, rtol=RTOL), "mismatch (E=48 lane-pad path)"

    print("KERNEL_OK")
</pallas_src>

<mosaic_0001>
module attributes {stable_mosaic.version = 11 : i64} {
  func.func @predictor_ss_kernel(%arg0: i32, %arg1: memref<8x256xf32, #tpu.memory_space<vmem>>, %arg2: memref<256x128xbf16, #tpu.memory_space<vmem>>, %arg3: memref<1x128xf32, #tpu.memory_space<vmem>>, %arg4: memref<128x128xbf16, #tpu.memory_space<vmem>>, %arg5: memref<1x128xf32, #tpu.memory_space<vmem>>, %arg6: memref<8x128xf32, #tpu.memory_space<vmem>>) attributes {dimension_semantics = [#tpu.dimension_semantics<parallel>], iteration_bounds = array<i64: 4>, scalar_prefetch = 0 : i64, scratch_operands = 0 : i64, tpu.core_type = #tpu.core_type<tc>, window_params = [{transform_indices = @transform_0, window_bounds = array<i64: 8, 256>}, {pipeline_mode = #tpu.pipeline_mode<synchronous>, transform_indices = @transform_1, window_bounds = array<i64: 256, 128>}, {pipeline_mode = #tpu.pipeline_mode<synchronous>, transform_indices = @transform_2, window_bounds = array<i64: 1, 128>}, {pipeline_mode = #tpu.pipeline_mode<synchronous>, transform_indices = @transform_3, window_bounds = array<i64: 128, 128>}, {pipeline_mode = #tpu.pipeline_mode<synchronous>, transform_indices = @transform_4, window_bounds = array<i64: 1, 128>}, {transform_indices = @transform_5, window_bounds = array<i64: 8, 128>}]} {
    %c0 = arith.constant 0 : index
    %c0_0 = arith.constant 0 : index
    %0 = vector.load %arg1[%c0, %c0_0] : memref<8x256xf32, #tpu.memory_space<vmem>>, vector<8x256xf32>
    %1 = arith.truncf %0 : vector<8x256xf32> to vector<8x256xbf16>
    %c0_1 = arith.constant 0 : index
    %c0_2 = arith.constant 0 : index
    %2 = vector.load %arg2[%c0_1, %c0_2] : memref<256x128xbf16, #tpu.memory_space<vmem>>, vector<256x128xbf16>
    %cst = arith.constant dense<0.000000e+00> : vector<8x128xf32>
    %3 = tpu.matmul %1, %2, %cst {dimension_numbers = #tpu.dot_dimension_numbers<[1], [0], [0], [1], [0, 0, 1, 1], [], []>} : vector<8x256xbf16>, vector<256x128xbf16>, vector<8x128xf32> -> vector<8x128xf32>
    %c0_3 = arith.constant 0 : index
    %c0_4 = arith.constant 0 : index
    %4 = vector.load %arg3[%c0_3, %c0_4] : memref<1x128xf32, #tpu.memory_space<vmem>>, vector<1x128xf32>
    %5 = vector.broadcast %4 : vector<1x128xf32> to vector<8x128xf32>
    %6 = arith.addf %3, %5 : vector<8x128xf32>
    %cst_5 = arith.constant 5.000000e-01 : f32
    %7 = vector.broadcast %cst_5 : f32 to vector<8x128xf32>
    %8 = arith.mulf %7, %6 : vector<8x128xf32>
    %9 = arith.mulf %6, %6 : vector<8x128xf32>
    %10 = arith.mulf %9, %6 : vector<8x128xf32>
    %cst_6 = arith.constant 4.471500e-02 : f32
    %11 = vector.broadcast %cst_6 : f32 to vector<8x128xf32>
    %12 = arith.mulf %11, %10 : vector<8x128xf32>
    %13 = arith.addf %6, %12 : vector<8x128xf32>
    %cst_7 = arith.constant 0.797884583 : f32
    %14 = vector.broadcast %cst_7 : f32 to vector<8x128xf32>
    %15 = arith.mulf %14, %13 : vector<8x128xf32>
    %16 = math.tanh %15 : vector<8x128xf32>
    %cst_8 = arith.constant 1.000000e+00 : f32
    %17 = vector.broadcast %cst_8 : f32 to vector<8x128xf32>
    %18 = arith.addf %17, %16 : vector<8x128xf32>
    %19 = arith.mulf %8, %18 : vector<8x128xf32>
    %20 = arith.truncf %19 : vector<8x128xf32> to vector<8x128xbf16>
    %c0_9 = arith.constant 0 : index
    %c0_10 = arith.constant 0 : index
    %21 = vector.load %arg4[%c0_9, %c0_10] : memref<128x128xbf16, #tpu.memory_space<vmem>>, vector<128x128xbf16>
    %cst_11 = arith.constant dense<0.000000e+00> : vector<8x128xf32>
    %22 = tpu.matmul %20, %21, %cst_11 {dimension_numbers = #tpu.dot_dimension_numbers<[1], [0], [0], [1], [0, 0, 1, 1], [], []>} : vector<8x128xbf16>, vector<128x128xbf16>, vector<8x128xf32> -> vector<8x128xf32>
    %c0_12 = arith.constant 0 : index
    %c0_13 = arith.constant 0 : index
    %23 = vector.load %arg5[%c0_12, %c0_13] : memref<1x128xf32, #tpu.memory_space<vmem>>, vector<1x128xf32>
    %24 = vector.broadcast %23 : vector<1x128xf32> to vector<8x128xf32>
    %25 = arith.addf %22, %24 : vector<8x128xf32>
    %cst_14 = arith.constant 5.000000e-01 : f32
    %26 = vector.broadcast %cst_14 : f32 to vector<8x128xf32>
    %27 = arith.mulf %26, %25 : vector<8x128xf32>
    %28 = arith.mulf %25, %25 : vector<8x128xf32>
    %29 = arith.mulf %28, %25 : vector<8x128xf32>
    %cst_15 = arith.constant 4.471500e-02 : f32
    %30 = vector.broadcast %cst_15 : f32 to vector<8x128xf32>
    %31 = arith.mulf %30, %29 : vector<8x128xf32>
    %32 = arith.addf %25, %31 : vector<8x128xf32>
    %cst_16 = arith.constant 0.797884583 : f32
    %33 = vector.broadcast %cst_16 : f32 to vector<8x128xf32>
    %34 = arith.mulf %33, %32 : vector<8x128xf32>
    %35 = math.tanh %34 : vector<8x128xf32>
    %cst_17 = arith.constant 1.000000e+00 : f32
    %36 = vector.broadcast %cst_17 : f32 to vector<8x128xf32>
    %37 = arith.addf %36, %35 : vector<8x128xf32>
    %38 = arith.mulf %27, %37 : vector<8x128xf32>
    %c0_18 = arith.constant 0 : index
    %c0_19 = arith.constant 0 : index
    %39 = vector.load %arg6[%c0_18, %c0_19] : memref<8x128xf32, #tpu.memory_space<vmem>>, vector<8x128xf32>
    tpu.vector_store %arg6[%c0_18, %c0_19], %38 {strides = array<i32>} : memref<8x128xf32, #tpu.memory_space<vmem>>, vector<8x128xf32>,
    return
  }
  func.func @transform_0(%arg0: i32) -> (i32, i32) {
    %c0_i32 = arith.constant 0 : i32
    %c0_i32_0 = arith.constant 0 : i32
    return %arg0, %c0_i32 : i32, i32
  }
  func.func @transform_1(%arg0: i32) -> (i32, i32) {
    %c0_i32 = arith.constant 0 : i32
    %c0_i32_0 = arith.constant 0 : i32
    %c0_i32_1 = arith.constant 0 : i32
    return %c0_i32, %c0_i32_0 : i32, i32
  }
  func.func @transform_2(%arg0: i32) -> (i32, i32) {
    %c0_i32 = arith.constant 0 : i32
    %c0_i32_0 = arith.constant 0 : i32
    %c0_i32_1 = arith.constant 0 : i32
    return %c0_i32, %c0_i32_0 : i32, i32
  }
  func.func @transform_3(%arg0: i32) -> (i32, i32) {
    %c0_i32 = arith.constant 0 : i32
    %c0_i32_0 = arith.constant 0 : i32
    %c0_i32_1 = arith.constant 0 : i32
    return %c0_i32, %c0_i32_0 : i32, i32
  }
  func.func @transform_4(%arg0: i32) -> (i32, i32) {
    %c0_i32 = arith.constant 0 : i32
    %c0_i32_0 = arith.constant 0 : i32
    %c0_i32_1 = arith.constant 0 : i32
    return %c0_i32, %c0_i32_0 : i32, i32
  }
  func.func @transform_5(%arg0: i32) -> (i32, i32) {
    %c0_i32 = arith.constant 0 : i32
    %c0_i32_0 = arith.constant 0 : i32
    return %arg0, %c0_i32 : i32, i32
  }
}

</mosaic_0001>

<bundles_post_ra>
// kernel: tpu_custom_call.1
= control target key start
LH: loop header
LB: loop body
LE: loop exit
PB: predicated region body
PF: predicated region fallthrough
CT: control target
= control target key end

     0   :  { %10 = vsyncpa [#allocation3], 0  ;;  %s1305_s0 = inlined_call_operand.hbm [shape: f32[32,256], index: 0, kind: input, shape index: {}]   ;;  %s1306_s1 = inlined_call_operand.hbm [shape: bf16[256,128], index: 1, kind: input, shape index: {}]   ;;  %s1307_s2 = inlined_call_operand.vmem [shape: f32[1,128], index: 2, kind: input, shape index: {}]   ;;  %s1308_s3 = inlined_call_operand.hbm [shape: bf16[128,128], index: 3, kind: input, shape index: {}]   ;;  %s1309_s4 = inlined_call_operand.vmem [shape: f32[1,128], index: 4, kind: input, shape index: {}]   ;;  %s1310_s5 = inlined_call_operand.hbm [shape: f32[32,128], index: 5, kind: output, shape index: {}]  }
   0x1   :  { %12 = vsyncpa [#allocation3 + $0x1], 0 }
   0x2   :  { %13 = vsyncpa [#allocation6], 0 }
   0x3   :  { %14 = vsyncpa [#allocation4], 0 }
   0x4   :  { %16 = vsyncpa [#allocation4 + $0x1], 0  ;;  %s1074_s18 = smov 0   ;;  %s1076_s19 = smov 0  }
   0x5   :  { %s1078_s20 = smov 0   ;;  %s1080_s21 = smov 0  }
   0x6 LB: > { %s1095_s22 = sadd.s32 4294967295, %s1034_s21   ;;  %s684_s23 = sadd.s32 4294967294, %s1034_s21   ;;  %s1034_s21 = sphi %s1080_s21, %s1329_s21   ;;  %s1030_s20 = sphi %s1078_s20, %s1328_s20   ;;  %s1026_s19 = sphi %s1076_s19, %s1327_s19   ;;  %s1022_s18 = sphi %s1074_s18, %s1326_s18  }
   0x7   : > { %p42_p0 = scmp.ne.s32.totalorder %s1026_s19, %s1022_s18  ;;  %p1311_p1 = scmp.eq.s32.totalorder %s1095_s22, 0 }
   0x8   : > { %p156_p3 = scmp.eq.s32.totalorder %s684_s23, 3  ;;  %p685_p5 = scmp.ge.s32.totalorder %s1034_s21, 1 }
   0x9   : > { %p1104_p4 = por %p1311_p1, %p42_p0  ;;  %p163_p7 = scmp.lt.s32.totalorder %s1034_s21, 5 }
   0xa   : > { %p1109_p6 = por %p156_p3, %p42_p0  ;;  %s1036_s27 = smov [#allocation5]  }
   0xb   : > { %s1314_s24 = scalar_select %p1104_p4, 1, 0 }
   0xc   : > { %s1315_s25 = scalar_select %p1109_p6, 1, 0 }
   0xd   : > { %p1114_p8 = pnand %p685_p5, %p163_p7  ;;  %s175_s28 = sshll.u32 %s1036_s27, 4  ;;  %s176_s28 = int_to_ptr.vmem [resolvable:$true] %s175_s28 }
   0xe   : > { %s1037_s30 = smov [#allocation7]   ;;  %s878_s9 = scalar_lea.hbm %s1306_s1, 2048 }
   0xf   : > { %s1316_s26 = scalar_select %p1114_p8, 1, 0 }
  0x10   : > { %p791_p9 = pneg %p1114_p8  ;;  %s191_s6 = sshll.u32 %s1037_s30, 4  ;;  %s1126_s6 = int_to_ptr.vmem [resolvable:$true] %s191_s6 }
  0x11   : > { %p879_p11 = scmp.ne.s32.totalorder %s1306_s1, %s878_s9  ;;  %p885_p3 = scmp.lt.u32.totalorder %s878_s9, %s1306_s1 }
  0x12   : > { %p1122_p10 = pnand %p791_p9, %p1311_p1 }
  0x14   : > { %p880_p12 = pneg %p1122_p10 }
  0x16   : > { %p881_p13 = pnand %p880_p12, %p879_p11 }
  0x18   : > { %p882_p0 = pneg %p881_p13 }
  0x1a   : > { %p887_p5 = pnand %p885_p3, %p882_p0 }
  0x1c   : > { %890 = shalt.err (!%p887_p5)
}
  0x1d   : > { %s891_s14 = scalar_lea.vmem %s176_s28, 2048  ;;  %p899_p2 = scmp.lt.s32.totalorder %s176_s28, %s176_s28 }
  0x1e   : > { %p892_p7 = scmp.ne.s32.totalorder %s176_s28, %s891_s14  ;;  %p900_p6 = scmp.lt.s32.totalorder %s891_s14, %s891_s14 }
  0x20   : > { %p894_p9 = pnand %p892_p7, %p880_p12  ;;  %p901_p4 = por %p900_p6, %p899_p2 }
  0x22   : > { %p895_p1 = pneg %p894_p9 }
  0x24   : > { %p902_p8 = pnand %p901_p4, %p895_p1 }
  0x26   : > { %905 = shalt.err (!%p902_p8)
}
  0x27   : > { %s1038_s15 = smov 64   ;;  %s1039_s16 = smov 4  }
  0x28   : > { %794 = dma.hbm_to_vmem [thread:$0]  (!%p1122_p10), %s1306_s1, 2048, %s176_s28, [#allocation6], %s1038_s15, %s1038_s15, %s1039_s16  }
  0x29   : > { %s906_s7 = scalar_lea.hbm %s1308_s3, 1024 }
  0x2a   : > { %p907_p11 = scmp.ne.s32.totalorder %s1308_s3, %s906_s7  ;;  %p913_p4 = scmp.lt.u32.totalorder %s906_s7, %s1308_s3 }
  0x2c   : > { %p909_p1 = pnand %p907_p11, %p880_p12 }
  0x2e   : > { %p910_p2 = pneg %p909_p1 }
  0x30   : > { %p915_p6 = pnand %p913_p4, %p910_p2 }
  0x32   : > { %918 = shalt.err (!%p915_p6)
}
  0x33   : > { %s919_s28 = scalar_lea.vmem %s1126_s6, 1024  ;;  %p927_p3 = scmp.lt.s32.totalorder %s1126_s6, %s1126_s6 }
  0x34   : > { %p920_p8 = scmp.ne.s32.totalorder %s1126_s6, %s919_s28  ;;  %p928_p5 = scmp.lt.s32.totalorder %s919_s28, %s919_s28 }
  0x36   : > { %p922_p13 = pnand %p920_p8, %p880_p12  ;;  %p929_p7 = por %p928_p5, %p927_p3 }
  0x38   : > { %p923_p0 = pneg %p922_p13 }
  0x3a   : > { %p930_p9 = pnand %p929_p7, %p923_p0 }
  0x3c   : > { %933 = shalt.err (!%p930_p9)
}
  0x3d   : > { %797 = dma.hbm_to_vmem [thread:$0]  (!%p1122_p10), %s1308_s3, 1024, %s1126_s6, [#allocation6], %s1038_s15, %s1038_s15, %s1039_s16  }
  0x3e   : > { %s1176_s14 = sadd.s32 1, %s1034_s21   ;;  %s29_s29 = sadd.s32 1, %s1030_s20 }
  0x3f   : > { %s26_s17 = ssub.s32 %s1034_s21, %s1176_s14  ;;  %p36_p12 = scmp.ne.s32.totalorder %s1030_s20, %s1026_s19 }
  0x40   : > { %p27_p11 = scmp.eq.s32.totalorder %s26_s17, 0  ;;  %p37_p1 = scmp.eq.s32.totalorder %s1034_s21, 0 }
  0x41   : > { %p1318_p2 = scmp.eq.s32.totalorder %s1095_s22, 3  ;;  %p808_p6 = scmp.lt.s32.totalorder %s1034_s21, 4 }
  0x42   : > { %s1192_s27 = scalar_select %p27_p11, %s1030_s20, %s29_s29  }
  0x43   : > { %p1186_p4 = por %p1318_p2, %p36_p12  ;;  %p38_p8 = por %p37_p1, %p36_p12 }
  0x44   : > { %s208_s30 = sand.u32 1, %s1030_s20   ;;  %s727_s6 = sshll.u32 %s1034_s21, 8 }
  0x45   : > { %s689_s7 = sshll.u32 %s208_s30, 4  ;;  %s1199_s8 = scalar_lea.hbm %s1305_s0, %s727_s6 }
  0x46   : > { %s212_s9 = scalar_lea.vmem [#allocation2], %s689_s7  ;;  %p1203_p10 = pnand %p808_p6, %p38_p8 }
  0x47   : > { %s220_s10 = sshll.u32 %s212_s9, 4  ;;  %s209_s28 = scalar_lea.sflag [#allocation3], %s208_s30  ;;  %s1201_s10 = int_to_ptr.vmem [resolvable:$true] %s220_s10 }
  0x48   : > { %s934_s12 = scalar_lea.hbm %s1199_s8, 256  ;;  %p936_p0 = pneg %p1203_p10 }
  0x49   : > { %p935_p13 = scmp.ne.s32.totalorder %s1199_s8, %s934_s12  ;;  %s939_s17 = scalar_lea.hbm %s1305_s0, 1024 }
  0x4a   : > { %p940_p7 = scmp.lt.u32.totalorder %s1199_s8, %s1305_s0  ;;  %p941_p9 = scmp.lt.u32.totalorder %s939_s17, %s934_s12 }
  0x4b   : > { %p937_p3 = pnand %p936_p0, %p935_p13  ;;  %p943_p11 = scmp.lt.u32.totalorder %s934_s12, %s1199_s8 }
  0x4c   : > { %p942_p12 = por %p941_p9, %p940_p7 }
  0x4d   : > { %p938_p5 = pneg %p937_p3 }
  0x4e   : > { %p944_p1 = por %p943_p11, %p942_p12 }
  0x50   : > { %p945_p2 = pnand %p944_p1, %p938_p5 }
  0x52   : > { %948 = shalt.err (!%p945_p2)
}
  0x53   : > { %s949_s30 = scalar_lea.vmem %s1201_s10, 256  ;;  %s1040_s15 = smov [#allocation2]  }
  0x54   : > { %p950_p6 = scmp.ne.s32.totalorder %s1201_s10, %s949_s30  ;;  %s954_s16 = sshll.u32 %s1040_s15, 4  ;;  %s955_s16 = int_to_ptr.vmem [resolvable:$false] %s954_s16 }
  0x55   : > { %s956_s9 = scalar_lea.vmem %s955_s16, 512  ;;  %p957_p3 = scmp.lt.s32.totalorder %s1201_s10, %s955_s16 }
  0x56   : > { %p952_p8 = pnand %p950_p6, %p936_p0  ;;  %p958_p7 = scmp.lt.s32.totalorder %s956_s9, %s949_s30 }
  0x58   : > { %p953_p13 = pneg %p952_p8  ;;  %p959_p9 = por %p958_p7, %p957_p3 }
  0x5a   : > { %p960_p12 = pnand %p959_p9, %p953_p13 }
  0x5c   : > { %963 = shalt.err (!%p960_p12)
}
  0x5d   : > { %801 = dma.hbm_to_vmem [thread:$0]  (!%p1203_p10), %s1199_s8, 256, %s1201_s10, %s209_s28  }
  0x5e   : > { %p1321_p5 = scmp.ne.s32.totalorder %s1316_s26, 0 }
  0x5f   : > { %s1235_s12 = sand.u32 (!%p1321_p5), 1, %s1026_s19   ;;  %p1322_p0 = scmp.ne.s32.totalorder (!%p1321_p5), %s1314_s24, 0 }
  0x60   : > { %229 = sbr.rel (%p1321_p5) target bundleno = 637 (0x27d), region = 40  ;;  %s693_s13 = sshll.u32 (!%p1321_p5), %s1235_s12, 4 }
  0x61   : > { %s232_s29 = scalar_lea.sflag (!%p1321_p5), [#allocation3], %s1235_s12  ;;  %s1239_s17 = scalar_lea.vmem (!%p1321_p5), [#allocation2], %s693_s13 }
  0x67   : > { %1009 = dma.done.wait (%p1322_p0), %s232_s29, 256  }
  0x68   : > { %1011 = vsyncadd (%p1322_p0), %s232_s29, 4294967040  ;;  %p1323_p10 = scmp.eq.s32.totalorder %s1095_s22, 0 }
  0x6a   : > { %1013 = dma.done.wait (%p1323_p10), [#allocation6], 3072   ;;  %p1324_p11 = pmov %p1323_p10 }
  0x6b   : > { %v850_v0 = vld [vmem:[#allocation5 + $0x40] sm:$0xff]   ;;  %v852_v2 = vld [vmem:[#allocation5 + $0x48] sm:$0xff]   ;;  %v854_v4 = vld [vmem:[#allocation5 + $0x50] sm:$0xff]   ;;  %v1041_v21 = vmov 0.0   ;;  %vm1042_vm0 = vmmov 0   ;;  %s696_s11 = sshll.u32 %s1235_s12, 3 }
  0x6c   : > { %1015 = vsyncadd (%p1324_p11), [#allocation6], 4294964224  ;;  %v851_v1 = vld [vmem:[#allocation5] sm:$0xff]   ;;  %728 = vmatprep.subr.bf16.mxu0 %v850_v0  ;;  %v853_v3 = vld [vmem:[#allocation5 + $0x8] sm:$0xff]   ;;  %759 = vmatprep.subr.bf16.mxu1 %v1041_v21  ;;  %s724_s28 = sshll.u32 %s1095_s22, 7  ;;  %s269_s7 = scalar_lea.vmem [#allocation8], %s696_s11 }
  0x6d   : > { %729 = vmatpush3.bf16.msra.mxu0 %v851_v1  ;;  %v855_v5 = vld [vmem:[#allocation5 + $0x10] sm:$0xff]   ;;  %v856_v6 = vld [vmem:[#allocation5 + $0x58] sm:$0xff]   ;;  %v858_v8 = vld [vmem:[#allocation5 + $0x60] sm:$0xff]   ;;  %775 = vmatprep.mubr.msk.bf16.mxu1 %vm1042_vm0, %v1041_v21  ;;  %s595_s6 = sshll.u32 %s269_s7, 4  ;;  %s1262_s16 = scalar_lea.hbm %s1310_s5, %s724_s28  ;;  %s1264_s6 = int_to_ptr.vmem [resolvable:$true] %s595_s6 }
  0x6e   : > { %730 = vmatprep.subr.bf16.mxu0 %v852_v2  ;;  %v857_v7 = vld [vmem:[#allocation5 + $0x18] sm:$0xff]   ;;  %v859_v9 = vld [vmem:[#allocation5 + $0x20] sm:$0xff]   ;;  %v860_v10 = vld [vmem:[#allocation5 + $0x68] sm:$0xff]   ;;  %s582_s9 = scalar_lea.sflag [#allocation4], %s1235_s12  ;;  %s964_s13 = scalar_lea.vmem %s1264_s6, 128 }
  0x6f   : > { %v272_v11 = vld [vmem:[%s1239_s17 + $0x8] sm:$0xff]  ;;  %v862_v14 = vld [vmem:[#allocation5 + $0x70] sm:$0xff]   ;;  %v866_v20 = vld [vmem:[#allocation7] sm:$0xff]   ;;  %p965_p1 = scmp.ne.s32.totalorder %s1264_s6, %s964_s13  ;;  %s1043_s22 = smov [#allocation8]  }
  0x70   : > { %v861_v12 = vld [vmem:[#allocation5 + $0x28] sm:$0xff]   ;;  %v274_v13 = vpack.c.bf16 %v272_v11, %v272_v11  ;;  %v863_v15 = vld [vmem:[#allocation5 + $0x30] sm:$0xff]   ;;  %v864_v16 = vld [vmem:[#allocation5 + $0x78] sm:$0xff]   ;;  %760 = vmatpush3.bf16.msra.mxu1 %v866_v20  ;;  %s968_s29 = sshll.u32 %s1043_s22, 4  ;;  %s969_s29 = int_to_ptr.vmem [resolvable:$false] %s968_s29 }
  0x71   : > { %731 = vmatpush3.bf16.msra.mxu0 %v853_v3  ;;  %v865_v17 = vld [vmem:[#allocation5 + $0x38] sm:$0xff]   ;;  %v271_v18 = vld [vmem:[%s1239_s17] sm:$0xff]  ;;  %761 = vmatprep.subr.bf16.mxu1 %v1041_v21  ;;  %v867_v22 = vld [vmem:[#allocation7 + $0x8] sm:$0xff]   ;;  %p966_p2 = pnand %p965_p1, %p1186_p4  ;;  %s970_s17 = scalar_lea.vmem %s969_s29, 256 }
  0x72   : > { %732 = vmatprep.subr.bf16.mxu0 %v854_v4  ;;  %442 = vmatprep.mubr.bf16.mxu0 %v274_v13  ;;  %v273_v19 = vpack.c.bf16 %v271_v18, %v271_v18  ;;  %v868_v23 = vld [vmem:[#allocation7 + $0x10] sm:$0xff]   ;;  %v869_v24 = vld [vmem:[#allocation7 + $0x18] sm:$0xff]   ;;  %v870_v25 = vld [vmem:[#allocation7 + $0x20] sm:$0xff]   ;;  %p971_p8 = scmp.lt.s32.totalorder %s1264_s6, %s969_s29  ;;  %p972_p13 = scmp.lt.s32.totalorder %s970_s17, %s964_s13 }
  0x73   : > { %v871_v26 = vld [vmem:[#allocation7 + $0x28] sm:$0xff]   ;;  %v872_v27 = vld [vmem:[#allocation7 + $0x30] sm:$0xff]   ;;  %v873_v28 = vld [vmem:[#allocation7 + $0x38] sm:$0xff]   ;;  %p967_p6 = pneg %p966_p2 }
  0x74   : > { %762 = vmatpush3.bf16.msra.mxu1 %v867_v22  ;;  %v697_v30 = vld [vmem:[%s1307_s2] ss:$0 sm:$0xff]  ;;  %p973_p3 = por %p972_p13, %p971_p8 }
  0x75   : > { %733 = vmatpush3.bf16.msra.mxu0 %v855_v5  ;;  %763 = vmatprep.subr.bf16.mxu1 %v1041_v21  ;;  %v714_v46 = vld [vmem:[%s1309_s4] ss:$0 sm:$0xff] }
  0x76   : > { %734 = vmatprep.subr.bf16.mxu0 %v856_v6  ;;  %p974_p7 = pnand %p973_p3, %p967_p6 }
  0x78   : > { %764 = vmatpush3.bf16.msra.mxu1 %v868_v23 }
  0x79   : > { %735 = vmatpush3.bf16.msra.mxu0 %v857_v7  ;;  %765 = vmatprep.subr.bf16.mxu1 %v1041_v21 }
  0x7a   : > { %736 = vmatprep.subr.bf16.mxu0 %v858_v8 }
  0x7c   : > { %766 = vmatpush3.bf16.msra.mxu1 %v869_v24 }
  0x7d   : > { %737 = vmatpush3.bf16.msra.mxu0 %v859_v9  ;;  %767 = vmatprep.subr.bf16.mxu1 %v1041_v21 }
  0x7e   : > { %738 = vmatprep.subr.bf16.mxu0 %v860_v10 }
  0x80   : > { %768 = vmatpush3.bf16.msra.mxu1 %v870_v25 }
  0x81   : > { %739 = vmatpush3.bf16.msra.mxu0 %v861_v12  ;;  %769 = vmatprep.subr.bf16.mxu1 %v1041_v21 }
  0x82   : > { %740 = vmatprep.subr.bf16.mxu0 %v862_v14 }
  0x84   : > { %770 = vmatpush3.bf16.msra.mxu1 %v871_v26 }
  0x85   : > { %741 = vmatpush3.bf16.msra.mxu0 %v863_v15  ;;  %771 = vmatprep.subr.bf16.mxu1 %v1041_v21 }
  0x86   : > { %742 = vmatprep.subr.bf16.mxu0 %v864_v16 }
  0x88   : > { %772 = vmatpush3.bf16.msra.mxu1 %v872_v27 }
  0x89   : > { %743 = vmatpush3.bf16.msra.mxu0 %v865_v17  ;;  %773 = vmatprep.subr.bf16.mxu1 %v1041_v21 }
  0x8c   : > { %443 = vmatmul.mubr.bf16.vlgmr.msra.gmra.mrb[0].mxu0 %v273_v19  ;;  %774 = vmatpush3.bf16.msra.mxu1 %v873_v28 }
 0x15f   : > { %v744_v29 = vpop.f32.mrb[0].mxu0 }
 0x160   : > { %v745_v31 = vpop.f32.mrb[1].mxu0 }
 0x161   : > { %v746_v32 = vadd.f32 %v745_v31, %v744_v29  ;;  %v747_v33 = vpop.f32.mrb[2].mxu0 }
 0x162   : > { %v748_v34 = vpop.f32.mrb[3].mxu0 }
 0x163   : > { %v445_v35 = vadd.f32 %v746_v32, %v697_v30 }
 0x165   : > { %v451_v36 = vmul.f32 %v445_v35, %v445_v35  ;;  %v450_v42 = vmul.f32 0.5, %v445_v35 }
 0x167   : > { %v452_v37 = vmul.f32 %v451_v36, %v445_v35 }
 0x169   : > { %v453_v38 = vmul.f32 0.044715, %v452_v37 }
 0x16b   : > { %v454_v39 = vadd.f32 %v453_v38, %v445_v35 }
 0x16d   : > { %v455_v40 = vmul.f32 0.7978846, %v454_v39 }
 0x16f   : > { %874 = vtanh.f32 %v455_v40 }
 0x179   : > { %v875_v41 = vpop.eup %874 }
 0x17a   : > { %v457_v43 = vadd.f32 1.0, %v875_v41 }
 0x17c   : > { %v458_v44 = vmul.f32 %v457_v43, %v450_v42 }
 0x17e   : > { %v459_v45 = vpack.c.bf16 %v458_v44, %v458_v44 }
 0x180   : > { %776 = vmatmul.mubr.bf16.vlgmr.msra.gmra.mrb[0].mxu1 %v459_v45 }
 0x253   : > { %v565_v47 = vpop.f32.mrb[0].mxu1 }
 0x254   : > { %v566_v48 = vadd.f32 %v714_v46, %v565_v47  ;;  %v777_v49 = vpop.f32.mrb[1].mxu1 }
 0x255   : > { %v568_v50 = vpop.f32.mrb[2].mxu1 }
 0x256   : > { %v572_v51 = vmul.f32 %v566_v48, %v566_v48  ;;  %v778_v52 = vpop.f32.mrb[3].mxu1  ;;  %v571_v58 = vmul.f32 0.5, %v566_v48 }
 0x258   : > { %v573_v53 = vmul.f32 %v572_v51, %v566_v48 }
 0x25a   : > { %v574_v54 = vmul.f32 0.044715, %v573_v53 }
 0x25c   : > { %v575_v55 = vadd.f32 %v574_v54, %v566_v48 }
 0x25e   : > { %v576_v56 = vmul.f32 0.7978846, %v575_v55 }
 0x260   : > { %876 = vtanh.f32 %v576_v56 }
 0x26a   : > { %v877_v57 = vpop.eup %876 }
 0x26b   : > { %v578_v59 = vadd.f32 1.0, %v877_v57 }
 0x26d   : > { %v579_v60 = vmul.f32 %v578_v59, %v571_v58 }
 0x26f   : > { %580 = vst [vmem:[%s269_s7] sm:$0xff] %v579_v60 }
 0x270   : > { %977 = shalt.err (!%p974_p7)
}
 0x271   : > { %s978_s12 = scalar_lea.hbm %s1262_s16, 128  ;;  %s982_s8 = scalar_lea.hbm %s1310_s5, 512 }
 0x272   : > { %p979_p9 = scmp.ne.s32.totalorder %s1262_s16, %s978_s12  ;;  %p983_p0 = scmp.lt.u32.totalorder %s1262_s16, %s1310_s5 }
 0x273   : > { %p984_p10 = scmp.lt.u32.totalorder %s982_s8, %s978_s12  ;;  %p986_p1 = scmp.lt.u32.totalorder %s978_s12, %s1262_s16 }
 0x274   : > { %p980_p12 = pnand %p979_p9, %p1186_p4 }
 0x275   : > { %p985_p11 = por %p984_p10, %p983_p0 }
 0x276   : > { %p981_p5 = pneg %p980_p12 }
 0x277   : > { %p987_p2 = por %p986_p1, %p985_p11 }
 0x279   : > { %p988_p6 = pnand %p987_p2, %p981_p5 }
 0x27b   : > { %991 = shalt.err (!%p988_p6)
}
 0x27c   : > { %789 = dma.vmem_to_hbm [thread:$0]  (%p1186_p4), %s1264_s6, 128, %s1262_s16, %s582_s9  }
 0x27d PF: > { %p811_p8 = scmp.ge.s32.totalorder %s1034_s21, 2  ;;  %s607_s28 = sand.u32 1, %s1022_s18  }
 0x27e   : > { %p1325_p13 = scmp.ne.s32.totalorder %s1315_s25, 0  ;;  %s608_s7 = scalar_lea.sflag [#allocation4], %s607_s28 }
 0x280   : > { %p803_p3 = pnand %p811_p8, %p1325_p13 }
 0x282   : > { %1017 = dma.done.wait (!%p803_p3), %s608_s7, 128  }
 0x283   : > { %1019 = vsyncadd (!%p803_p3), %s608_s7, 4294967168  ;;  %p19_p7 = scmp.ge.s32.totalorder %s1176_s14, 6   ;;  %s1326_s18 = smov %s1026_s19 }
 0x284   : > { %s1327_s19 = smov %s1030_s20  ;;  %s1328_s20 = smov %s1192_s27 }
 0x285   : > { %s1329_s21 = smov %s1176_s14  ;;  %21 = sbr.rel (!%p19_p7) target bundleno = 6 (0x6), region = 93 }
 0x28c   :  { %613 = vsyncpa [#allocation3], 1 }
 0x28d   :  { %615 = vsyncpa [#allocation3 + $0x1], 1 }
 0x28e   :  { %616 = vsyncpa [#allocation6], 1 }
 0x28f   :  { %617 = vsyncpa [#allocation4], 1 }
 0x290   :  { %619 = vsyncpa [#allocation4 + $0x1], 1 }

</bundles_post_ra>
